<compile_context>
chip_gen: v5e
topology: v5e:2x2
jax: 0.10.0
libtpu: 0.0.40
codegen_flags: <defaults>
</compile_context>

<pallas_src>
import functools
import math

import numpy as np
import jax
import jax.numpy as jnp
from jax.experimental import pallas as pl
from jax.experimental.pallas import tpu as pltpu

HIDDEN = 32
DEPTH = 3                 # args.sub_graph_depth
IMG_H, IMG_W = 200, 100   # BEV grid (the reference hard-codes the `*100` flattening)
LN_EPS = 1e-5             # DenseTNT LayerNorm eps


# ----------------------------------------------------------------------------
# Small helpers
# ----------------------------------------------------------------------------
def _full_spec(shape):
    """BlockSpec covering the whole array (grid=(1,))."""
    if len(shape) == 2:
        return pl.BlockSpec(shape, lambda i: (0, 0))
    if len(shape) == 3:
        return pl.BlockSpec(shape, lambda i: (0, 0, 0))
    raise ValueError(f"unsupported rank for full block spec: {shape}")


# ----------------------------------------------------------------------------
# Pallas kernels
# ----------------------------------------------------------------------------
def _linear_kernel(x_ref, w_ref, b_ref, o_ref, *, relu):
    y = jnp.dot(x_ref[...], w_ref[...], preferred_element_type=jnp.float32) + b_ref[...]
    if relu:
        y = jnp.maximum(y, 0.0)
    o_ref[...] = y


def linear_pallas(x, w, b, *, relu=False, row_tile=2048):
    """y = x @ w + b (optionally ReLU). x: [N, Din], w: [Din, Dout], b: [Dout]."""
    n, din = x.shape
    dout = w.shape[1]
    if n <= row_tile:
        tile, n_pad, xp = n, n, x
    else:
        tile = row_tile
        n_pad = ((n + tile - 1) // tile) * tile
        xp = jnp.pad(x, ((0, n_pad - n), (0, 0)))
    out = pl.pallas_call(
        functools.partial(_linear_kernel, relu=relu),
        out_shape=jax.ShapeDtypeStruct((n_pad, dout), jnp.float32),
        grid=(n_pad // tile,),
        in_specs=[
            pl.BlockSpec((tile, din), lambda i: (i, 0)),
            pl.BlockSpec((din, dout), lambda i: (0, 0)),
            pl.BlockSpec((1, dout), lambda i: (0, 0)),
        ],
        out_specs=pl.BlockSpec((tile, dout), lambda i: (i, 0)),
        compiler_params=pltpu.CompilerParams(dimension_semantics=("parallel",)),
    )(xp, w, b.reshape(1, dout))
    return out[:n]


def _subgraph_kernel(*refs, depth, num_heads, eps, post_proj):
    """Fused NewSubGraph forward + maxpool (+ optional processing_layer) for one batch item.

    x_ref:  [P, L, F]   padded polylines (zero padded, as in merge_tensors)
    len_ref:[P, 1, 1]   per-polyline valid lengths (float)
    out:    [P, F]      (or [P, Fp] when post_proj) max over the vector (L) axis
    """
    if post_proj:
        (x_ref, len_ref,
         w0_ref, b0_ref, g0_ref, bb0_ref,
         w1_ref, b1_ref, g1_ref, bb1_ref,
         wq_ref, bq_ref, wk_ref, bk_ref, wv_ref, bv_ref,
         lng_ref, lnb_ref, wp_ref, bp_ref, o_ref) = refs
    else:
        (x_ref, len_ref,
         w0_ref, b0_ref, g0_ref, bb0_ref,
         w1_ref, b1_ref, g1_ref, bb1_ref,
         wq_ref, bq_ref, wk_ref, bk_ref, wv_ref, bv_ref,
         lng_ref, lnb_ref, o_ref) = refs
        wp_ref = bp_ref = None

    P, L, F = x_ref.shape
    hd = F // num_heads

    # Additive attention mask built in-kernel from the lengths
    # (mask[p,i,j] = 0 if i<len and j<len else -10000, as in the reference).
    qi = jax.lax.broadcasted_iota(jnp.float32, (P, L, L), 1)
    kj = jax.lax.broadcasted_iota(jnp.float32, (P, L, L), 2)
    lens = len_ref[...]                                     # [P, 1, 1]
    neg_all = jnp.where(jnp.logical_and(qi < lens, kj < lens), 0.0, -10000.0)

    def layer_norm(y, g, b):
        u = jnp.mean(y, axis=-1, keepdims=True)
        s = jnp.mean((y - u) * (y - u), axis=-1, keepdims=True)
        return (y - u) * jax.lax.rsqrt(s + eps) * g + b

    def mlp(h, w, b, g, bb):
        # DenseTNT MLP: Linear -> LayerNorm -> ReLU
        y = jnp.dot(h, w, preferred_element_type=jnp.float32) + b
        return jnp.maximum(layer_norm(y, g, bb), 0.0)

    outs = []
    for p in range(P):                                      # static unroll, P <= 4
        h = x_ref[p]                                        # [L, F]
        neg = neg_all[p]                                    # [L, L]
        h = mlp(h, w0_ref[...], b0_ref[...], g0_ref[...], bb0_ref[...])
        h = mlp(h, w1_ref[...], b1_ref[...], g1_ref[...], bb1_ref[...])
        for d in range(depth):                              # static unroll, depth == 3
            # 1/sqrt(head_size) is already folded into wq/bq at init time.
            q = jnp.dot(h, wq_ref[d], preferred_element_type=jnp.float32) + bq_ref[d]
            k = jnp.dot(h, wk_ref[d], preferred_element_type=jnp.float32) + bk_ref[d]
            v = jnp.dot(h, wv_ref[d], preferred_element_type=jnp.float32) + bv_ref[d]
            ctx_heads = []
            for hh in range(num_heads):                     # static, num_heads == 2
                sl = slice(hh * hd, (hh + 1) * hd)
                sc = jax.lax.dot_general(q[:, sl], k[:, sl],
                                         (((1,), (1,)), ((), ())),
                                         preferred_element_type=jnp.float32)
                sc = sc + neg
                sc = sc - jnp.max(sc, axis=-1, keepdims=True)
                e = jnp.exp(sc)
                pr = e * pl.reciprocal(jnp.sum(e, axis=-1, keepdims=True), approx=True)
                ctx_heads.append(jnp.dot(pr, v[:, sl],
                                         preferred_element_type=jnp.float32))
            ctx = jnp.concatenate(ctx_heads, axis=-1) if num_heads > 1 else ctx_heads[0]
            # layer epilogue: ReLU -> residual -> LayerNorm (layers_2)
            h = layer_norm(jnp.maximum(ctx, 0.0) + h, lng_ref[d], lnb_ref[d])
        outs.append(jnp.max(h, axis=0, keepdims=True))      # [1, F]
    pooled = jnp.concatenate(outs, axis=0)                  # [P, F]
    if post_proj:
        # Fused processing_layer: Linear(2H, H) -> ReLU (Dropout(0.3) identity in eval)
        pooled = jnp.maximum(
            jnp.dot(pooled, wp_ref[...], preferred_element_type=jnp.float32) + bp_ref[...],
            0.0)
    o_ref[...] = pooled


def _global_attn_kernel(x_ref, len_ref, wq_ref, bq_ref, wk_ref, bk_ref,
                        wv_ref, bv_ref, o_ref):
    """Top-level GlobalGraph (single head), all batch items in one block.

    Reproduces the PyTorch quirk `attention_mask[i][:length][:length].fill_(1)`:
    the mask depends only on the QUERY index (rows >= length are fully masked).
    """
    B, N, H = x_ref.shape
    ri = jax.lax.broadcasted_iota(jnp.float32, (B, N, N), 1)
    lens = len_ref[...]                                     # [B, 1, 1]
    neg_all = jnp.where(ri < lens, 0.0, -10000.0)
    for b in range(B):                                      # static unroll, B small
        x = x_ref[b]                                        # [N, H]
        q = jnp.dot(x, wq_ref[...], preferred_element_type=jnp.float32) + bq_ref[...]
        k = jnp.dot(x, wk_ref[...], preferred_element_type=jnp.float32) + bk_ref[...]
        v = jnp.dot(x, wv_ref[...], preferred_element_type=jnp.float32) + bv_ref[...]
        sc = jax.lax.dot_general(q, k, (((1,), (1,)), ((), ())),
                                 preferred_element_type=jnp.float32)
        sc = sc + neg_all[b]
        sc = sc - jnp.max(sc, axis=-1, keepdims=True)
        e = jnp.exp(sc)
        pr = e * pl.reciprocal(jnp.sum(e, axis=-1, keepdims=True), approx=True)
        o_ref[b] = jnp.dot(pr, v, preferred_element_type=jnp.float32)


# ----------------------------------------------------------------------------
# Kernel wrappers
# ----------------------------------------------------------------------------
def subgraph_forward(sg, input_list, bev=None, post=None):
    """Fused NewSubGraph forward: torch.max(hidden_states, dim=1)[0]
    (+ fused processing_layer when `post` is given)."""
    hidden_states, lengths = merge_tensors(input_list)          # [P, L, F0]
    if bev is not None:
        # NOTE: as in the reference, this requires the per-polygon BEV point count to
        # equal the padded polyline length (true for this data layout).
        hidden_states = jnp.concatenate([hidden_states, bev], axis=-1)
    P, L, F = hidden_states.shape
    lens = jnp.asarray(lengths, dtype=jnp.float32).reshape(P, 1, 1)
    depth = int(sg['wq'].shape[0])
    args = [hidden_states, lens,
            sg['layer_0']['w'], sg['layer_0']['b'], sg['layer_0']['g'], sg['layer_0']['bb'],
            sg['layer_0_again']['w'], sg['layer_0_again']['b'],
            sg['layer_0_again']['g'], sg['layer_0_again']['bb'],
            sg['wq'], sg['bq'], sg['wk'], sg['bk'], sg['wv'], sg['bv'],
            sg['ln_g'], sg['ln_b']]
    out_dim = F
    if post is not None:
        args += [post['w'], post['b'].reshape(1, -1)]
        out_dim = int(post['w'].shape[1])
    return pl.pallas_call(
        functools.partial(_subgraph_kernel, depth=depth,
                          num_heads=sg['num_heads'], eps=LN_EPS,
                          post_proj=post is not None),
        out_shape=jax.ShapeDtypeStruct((P, out_dim), jnp.float32),
        grid=(1,),
        in_specs=[_full_spec(a.shape) for a in args],
        out_specs=_full_spec((P, out_dim)),
    )(*args)


def global_graph_forward(p, inputs, lengths):
    """Top-level GlobalGraph. inputs: [B, maxP, H]."""
    B, N, H = inputs.shape
    lens = jnp.asarray(lengths, dtype=jnp.float32).reshape(B, 1, 1)
    args = (inputs, lens, p['wq'], p['bq'], p['wk'], p['bk'], p['wv'], p['bv'])
    return pl.pallas_call(
        _global_attn_kernel,
        out_shape=jax.ShapeDtypeStruct((B, N, H), jnp.float32),
        grid=(1,),
        in_specs=[_full_spec(a.shape) for a in args],
        out_specs=_full_spec((B, N, H)),
    )(*args)


# ----------------------------------------------------------------------------
# Plain-JAX / numpy glue (index math, padding/merging)
# ----------------------------------------------------------------------------
def merge_tensors(tensor_list):
    lengths = [int(t.shape[0]) for t in tensor_list]
    max_len = max(lengths)
    rows = [jnp.pad(t, ((0, max_len - l), (0, 0))) for t, l in zip(tensor_list, lengths)]
    return jnp.stack(rows).astype(jnp.float32), lengths


def get_patch_idx(mapping, patch_height=1, patch_width=1,
                  image_height=IMG_H, image_width=IMG_W):
    agent_pos = [np.asarray(d['polygons'], dtype=np.float32) for d in mapping]
    coords = np.concatenate(agent_pos, axis=0)          # [total_polys, n_pts, 2]
    perception_height, perception_width = 60.0, 30.0
    scale_height = image_height / perception_height
    scale_width = image_width / perception_width
    scaled = coords.copy()
    scaled[..., 0] *= scale_width
    scaled[..., 1] *= scale_height
    translated = scaled.copy()
    translated[..., 0] += image_width / 2.0
    translated[..., 1] = image_height / 2.0 - translated[..., 1]
    patch = np.floor(translated / np.array([patch_width, patch_height], dtype=np.float32))
    patch = patch[..., [1, 0]]                          # [row(y), col(x)]
    v_patch, h_patch = image_height / patch_height, image_width / patch_width
    patch[..., 0] = np.clip(patch[..., 0], 0, int(v_patch) - 1)
    patch[..., 1] = np.clip(patch[..., 1], 0, int(h_patch) - 1)
    return patch


# ----------------------------------------------------------------------------
# Model pieces
# ----------------------------------------------------------------------------
def forward_encode_sub_graph(params, mapping, matrix, polyline_spans, batch_size):
    patch_indices = get_patch_idx(mapping)                          # [TP, n_pts, 2]
    num_polygons = [len(m['polygons']) for m in mapping]
    new_patch_indices = (patch_indices[..., 0] * 100 + patch_indices[..., 1]).astype(np.int32)

    # Gather the polygon-point BEV cells FIRST, then apply the 1x1-conv input_proj to
    # only those rows (exact: a 1x1 conv commutes with the gather; the sine pos-embed
    # is computed-and-discarded in the reference, so it is skipped here).
    bev_embed = jnp.stack([jnp.asarray(m['bev_embed'], dtype=jnp.float32)
                           for m in mapping])                        # [B, H, W, 2*HIDDEN]
    B = bev_embed.shape[0]
    bev_flat = bev_embed.reshape(B, IMG_H * IMG_W, 2 * HIDDEN)
    poly_batch_idx = np.repeat(np.arange(B), num_polygons)
    selected_raw = bev_flat[jnp.asarray(poly_batch_idx)[:, None],
                            jnp.asarray(new_patch_indices)]          # [TP, n_pts, 2*HIDDEN]
    TP, n_pts, _ = selected_raw.shape
    proj = linear_pallas(selected_raw.reshape(TP * n_pts, 2 * HIDDEN),
                         params['input_proj']['w'], params['input_proj']['b'])
    selected = proj.reshape(TP, n_pts, HIDDEN)
    batch_features, off = [], 0
    for c in num_polygons:
        batch_features.append(selected[off:off + c])
        off += c

    input_list_list, map_input_list_list = [], []
    for i in range(batch_size):
        input_list, map_input_list = [], []
        ms_idx = mapping[i]['map_start_polyline_idx']
        for j, span in enumerate(polyline_spans[i]):
            t = jnp.asarray(matrix[i][span], dtype=jnp.float32)
            input_list.append(t)
            if j >= ms_idx:
                map_input_list.append(t)
        input_list_list.append(input_list)
        map_input_list_list.append(map_input_list)

    # Agent/element sub-graphs: one fused kernel per batch item.
    element_states_batch = [
        subgraph_forward(params['point_level_sub_graph'], input_list_list[i])
        for i in range(batch_size)
    ]

    # 'lane_scoring' in args.other_params: map sub-graphs with the processing_layer
    # (Linear(2H, H) + ReLU; Dropout(0.3) identity in eval) fused into the kernel.
    lane_states_batch = [
        subgraph_forward(params['point_level_sub_graph_map'],
                         map_input_list_list[i], bev=batch_features[i],
                         post=params['processing'])
        for i in range(batch_size)
    ]
    return element_states_batch, lane_states_batch


def vectornet_forward(params, mapping):
    matrix = [m['matrix'] for m in mapping]
    polyline_spans = [m['polyline_spans'] for m in mapping]
    batch_size = len(matrix)
    element_states_batch, lane_states_batch = forward_encode_sub_graph(
        params, mapping, matrix, polyline_spans, batch_size)

    inputs, inputs_lengths = merge_tensors(element_states_batch)    # [B, maxP, H]
    hidden_states = global_graph_forward(params['global_graph'], inputs, inputs_lengths)
    # TODO(synk): Decoder not provided in the module source; return encoder outputs.
    return hidden_states, inputs, lane_states_batch


# ----------------------------------------------------------------------------
# Deterministic parameter init
# ----------------------------------------------------------------------------
def init_linear(key, din, dout, scale=0.1):
    kw, kb = jax.random.split(key)
    return {'w': jax.random.normal(kw, (din, dout), jnp.float32) * scale,
            'b': jax.random.normal(kb, (dout,), jnp.float32) * scale}


def init_mlp(key, din, dout):
    lin = init_linear(key, din, dout)
    return {'w': lin['w'], 'b': lin['b'].reshape(1, dout),
            'g': jnp.ones((1, dout), jnp.float32),
            'bb': jnp.zeros((1, dout), jnp.float32)}


def init_attn(key, h, num_heads):
    # 1/sqrt(head_size) folded into the query projection (exact weight fold).
    kq, kk, kv = jax.random.split(key, 3)
    q, k, v = init_linear(kq, h, h), init_linear(kk, h, h), init_linear(kv, h, h)
    s = 1.0 / math.sqrt(h // num_heads)
    return {'wq': q['w'] * s, 'bq': (q['b'] * s).reshape(1, h),
            'wk': k['w'], 'bk': k['b'].reshape(1, h),
            'wv': v['w'], 'bv': v['b'].reshape(1, h)}


def init_subgraph(key, h, depth, num_heads=2):
    keys = jax.random.split(key, 2 + depth)
    attn = [init_attn(keys[2 + d], h, num_heads) for d in range(depth)]

    def stack(name):
        return jnp.stack([a[name] for a in attn])

    return {
        'layer_0': init_mlp(keys[0], h, h),
        'layer_0_again': init_mlp(keys[1], h, h),
        'wq': stack('wq'), 'bq': stack('bq'),
        'wk': stack('wk'), 'bk': stack('bk'),
        'wv': stack('wv'), 'bv': stack('bv'),
        'ln_g': jnp.ones((depth, 1, h), jnp.float32),
        'ln_b': jnp.zeros((depth, 1, h), jnp.float32),
        'num_heads': num_heads,
    }


def init_params(key):
    k1, k2, k3, k4, k5 = jax.random.split(key, 5)
    return {
        'point_level_sub_graph': init_subgraph(k1, HIDDEN, DEPTH, num_heads=2),
        'point_level_sub_graph_map': init_subgraph(k2, 2 * HIDDEN, DEPTH, num_heads=2),
        'global_graph': init_attn(k3, HIDDEN, num_heads=1),
        'processing': init_linear(k4, 2 * HIDDEN, HIDDEN),   # Linear(2H, H)
        'input_proj': init_linear(k5, 2 * HIDDEN, HIDDEN),   # Conv2d(2H, H, 1) as matmul
    }


# ----------------------------------------------------------------------------
# Main
# ----------------------------------------------------------------------------
if __name__ == "__main__":
    key = jax.random.PRNGKey(0)
    kp, kd = jax.random.split(key)
    params = init_params(kp)

    kd1, kd2, kd3, kd4, kd5 = jax.random.split(kd, 5)

    # Item 0: 3 polylines (1 agent + 2 map), lengths 5/6/4; 2 polygons x 6 points.
    # Item 1: 4 polylines (1 agent + 3 map), lengths 4/6/5/3; 3 polygons x 6 points.
    mat0 = np.asarray(jax.random.normal(kd1, (15, HIDDEN), jnp.float32) * 0.5)
    mat1 = np.asarray(jax.random.normal(kd2, (18, HIDDEN), jnp.float32) * 0.5)
    polys0 = np.asarray(jax.random.uniform(kd3, (2, 6, 2), jnp.float32,
                                           minval=-12.0, maxval=12.0))
    polys1 = np.asarray(jax.random.uniform(kd4, (3, 6, 2), jnp.float32,
                                           minval=-12.0, maxval=12.0))
    bev = np.asarray(jax.random.normal(kd5, (2, IMG_H, IMG_W, 2 * HIDDEN), jnp.float32) * 0.1)

    mapping = [
        {'matrix': mat0,
         'polyline_spans': [slice(0, 5), slice(5, 11), slice(11, 15)],
         'map_start_polyline_idx': 1,
         'polygons': polys0,
         'bev_embed': bev[0]},
        {'matrix': mat1,
         'polyline_spans': [slice(0, 4), slice(4, 10), slice(10, 15), slice(15, 18)],
         'map_start_polyline_idx': 1,
         'polygons': polys1,
         'bev_embed': bev[1]},
    ]

    hidden_states, inputs, lane_states_batch = vectornet_forward(params, mapping)
    jax.block_until_ready(hidden_states)
    jax.block_until_ready(inputs)
    for a in lane_states_batch:
        jax.block_until_ready(a)

    assert hidden_states.shape == (2, 4, HIDDEN)
    assert lane_states_batch[0].shape == (2, HIDDEN)
    assert lane_states_batch[1].shape == (3, HIDDEN)
    assert bool(jnp.all(jnp.isfinite(hidden_states)))
    assert all(bool(jnp.all(jnp.isfinite(a))) for a in lane_states_batch)
    print("KERNEL_OK")
</pallas_src>

<mosaic_0001>
module attributes {stable_mosaic.version = 11 : i64} {
  func.func @_linear_kernel(%arg0: i32, %arg1: memref<30x64xf32, #tpu.memory_space<vmem>>, %arg2: memref<64x32xf32, #tpu.memory_space<vmem>>, %arg3: memref<1x32xf32, #tpu.memory_space<vmem>>, %arg4: memref<30x32xf32, #tpu.memory_space<vmem>>) attributes {dimension_semantics = [#tpu.dimension_semantics<parallel>], iteration_bounds = array<i64: 1>, scalar_prefetch = 0 : i64, scratch_operands = 0 : i64, tpu.core_type = #tpu.core_type<tc>, window_params = [{transform_indices = @transform_0, window_bounds = array<i64: 30, 64>}, {pipeline_mode = #tpu.pipeline_mode<synchronous>, transform_indices = @transform_1, window_bounds = array<i64: 64, 32>}, {pipeline_mode = #tpu.pipeline_mode<synchronous>, transform_indices = @transform_2, window_bounds = array<i64: 1, 32>}, {transform_indices = @transform_3, window_bounds = array<i64: 30, 32>}]} {
    %c0 = arith.constant 0 : index
    %c0_0 = arith.constant 0 : index
    %0 = vector.load %arg1[%c0, %c0_0] : memref<30x64xf32, #tpu.memory_space<vmem>>, vector<30x64xf32>
    %c0_1 = arith.constant 0 : index
    %c0_2 = arith.constant 0 : index
    %1 = vector.load %arg2[%c0_1, %c0_2] : memref<64x32xf32, #tpu.memory_space<vmem>>, vector<64x32xf32>
    %cst = arith.constant dense<0.000000e+00> : vector<30x32xf32>
    %2 = tpu.matmul %0, %1, %cst {dimension_numbers = #tpu.dot_dimension_numbers<[1], [0], [0], [1], [0, 0, 1, 1], [], []>} : vector<30x64xf32>, vector<64x32xf32>, vector<30x32xf32> -> vector<30x32xf32>
    %c0_3 = arith.constant 0 : index
    %c0_4 = arith.constant 0 : index
    %3 = vector.load %arg3[%c0_3, %c0_4] : memref<1x32xf32, #tpu.memory_space<vmem>>, vector<1x32xf32>
    %4 = vector.broadcast %3 : vector<1x32xf32> to vector<30x32xf32>
    %5 = arith.addf %2, %4 : vector<30x32xf32>
    %c0_5 = arith.constant 0 : index
    %c0_6 = arith.constant 0 : index
    %6 = vector.load %arg4[%c0_5, %c0_6] : memref<30x32xf32, #tpu.memory_space<vmem>>, vector<30x32xf32>
    tpu.vector_store %arg4[%c0_5, %c0_6], %5 {strides = array<i32>} : memref<30x32xf32, #tpu.memory_space<vmem>>, vector<30x32xf32>,
    return
  }
  func.func @transform_0(%arg0: i32) -> (i32, i32) {
    %c0_i32 = arith.constant 0 : i32
    %c0_i32_0 = arith.constant 0 : i32
    return %arg0, %c0_i32 : i32, i32
  }
  func.func @transform_1(%arg0: i32) -> (i32, i32) {
    %c0_i32 = arith.constant 0 : i32
    %c0_i32_0 = arith.constant 0 : i32
    %c0_i32_1 = arith.constant 0 : i32
    return %c0_i32, %c0_i32_0 : i32, i32
  }
  func.func @transform_2(%arg0: i32) -> (i32, i32) {
    %c0_i32 = arith.constant 0 : i32
    %c0_i32_0 = arith.constant 0 : i32
    %c0_i32_1 = arith.constant 0 : i32
    return %c0_i32, %c0_i32_0 : i32, i32
  }
  func.func @transform_3(%arg0: i32) -> (i32, i32) {
    %c0_i32 = arith.constant 0 : i32
    %c0_i32_0 = arith.constant 0 : i32
    return %arg0, %c0_i32 : i32, i32
  }
}

</mosaic_0001>

<bundles_post_ra>
// kernel: tpu_custom_call.1
= control target key start
LH: loop header
LB: loop body
LE: loop exit
PB: predicated region body
PF: predicated region fallthrough
CT: control target
= control target key end

     0   :  { %s223_s0 = inlined_call_operand.vmem [shape: f32[30,64], index: 0, kind: input, shape index: {}]   ;;  %s224_s1 = inlined_call_operand.vmem [shape: f32[64,32], index: 1, kind: input, shape index: {}]   ;;  %s225_s2 = inlined_call_operand.vmem [shape: f32[1,32], index: 2, kind: input, shape index: {}]   ;;  %s226_s3 = inlined_call_operand.hbm [shape: f32[30,32], index: 3, kind: output, shape index: {}]  }
   0x1   :  { %v26_v0 = vld [vmem:[%s224_s1 + $0x38] sm:$0xff]  ;;  %v25_v1 = vld [vmem:[%s224_s1 + $0x30] sm:$0xff]  ;;  %v24_v2 = vld [vmem:[%s224_s1 + $0x28] sm:$0xff] }
   0x2   :  { %102 = vmatpush.msra.mxu2 %v26_v0  ;;  %103 = vmatpush.msra.mxu3 %v26_v0  ;;  %v23_v3 = vld [vmem:[%s224_s1 + $0x20] sm:$0xff] }
   0x3   :  { %52 = vmatpush.msra.mxu0 %v26_v0  ;;  %101 = vmatpush.msra.mxu1 %v26_v0 }
   0x4   :  { %105 = vmatpush.msra.mxu2 %v25_v1  ;;  %106 = vmatpush.msra.mxu3 %v25_v1 }
   0x5   :  { %53 = vmatpush.msra.mxu0 %v25_v1  ;;  %104 = vmatpush.msra.mxu1 %v25_v1 }
   0x6   :  { %8 = vsyncpa [#allocation3], 0  ;;  %108 = vmatpush.msra.mxu2 %v24_v2  ;;  %109 = vmatpush.msra.mxu3 %v24_v2  ;;  %v22_v4 = vld [vmem:[%s224_s1 + $0x18] sm:$0xff]  ;;  %v21_v5 = vld [vmem:[%s224_s1 + $0x10] sm:$0xff]  ;;  %vm31_vm0 = vcmask 523264   ;;  %vm73_vm1 = vcmask 261120  }
   0x7   :  { %54 = vmatpush.msra.mxu0 %v24_v2  ;;  %107 = vmatpush.msra.mxu1 %v24_v2  ;;  %v20_v6 = vld [vmem:[%s224_s1 + $0x8] sm:$0xff]  ;;  %v19_v7 = vld [vmem:[%s224_s1] sm:$0xff]  ;;  %v17_v8 = vld [vmem:[%s223_s0 + $0x10] sm:$0xff]  ;;  %s155_s10 = smov [#allocation2]   ;;  %vm77_vm2 = vcmask 259072   ;;  %s157_s14 = smov 8  }
   0x8   :  { %111 = vmatpush.msra.mxu2 %v23_v3  ;;  %112 = vmatpush.msra.mxu3 %v23_v3  ;;  %v18_v9 = vld [vmem:[%s223_s0 + $0x18] sm:$0x3f]  ;;  %v15_v10 = vld [vmem:[%s223_s0] sm:$0xff]  ;;  %v16_v11 = vld [vmem:[%s223_s0 + $0x8] sm:$0xff]  ;;  %s83_s11 = sshll.u32 %s155_s10, 4  ;;  %s85_s0 = sshll.u32 %s226_s3, 4  ;;  %s84_s11 = int_to_ptr.vmem [resolvable:$true] %s83_s11  ;;  %s86_s0 = int_to_ptr.hbm [resolvable:$true] %s85_s0 }
   0x9   :  { %55 = vmatpush.msra.mxu0 %v23_v3  ;;  %110 = vmatpush.msra.mxu1 %v23_v3  ;;  %v128_v12 = vld [vmem:[%s225_s2] ss:$0 sm:$0xff]  ;;  %s156_s2 = smov 128  }
   0xa   :  { %114 = vmatpush.msra.mxu2 %v22_v4  ;;  %115 = vmatpush.msra.mxu3 %v22_v4 }
   0xb   :  { %56 = vmatpush.msra.mxu0 %v22_v4  ;;  %113 = vmatpush.msra.mxu1 %v22_v4 }
   0xc   :  { %117 = vmatpush.msra.mxu2 %v21_v5  ;;  %118 = vmatpush.msra.mxu3 %v21_v5 }
   0xd   :  { %57 = vmatpush.msra.mxu0 %v21_v5  ;;  %116 = vmatpush.msra.mxu1 %v21_v5 }
   0xe   :  { %120 = vmatpush.msra.mxu2 %v20_v6  ;;  %121 = vmatpush.msra.mxu3 %v20_v6 }
   0xf   :  { %58 = vmatpush.msra.mxu0 %v20_v6  ;;  %119 = vmatpush.msra.mxu1 %v20_v6 }
  0x10   :  { %123 = vmatpush.msra.mxu2 %v19_v7  ;;  %124 = vmatpush.msra.mxu3 %v19_v7 }
  0x11   :  { %99 = vmatmul.msk.f32.vlgmr.msra.gmra.mxu2 %vm31_vm0, %v17_v8  ;;  %100 = vmatmul.msk.f32.vlgmr.msra.gmra.mxu3 %vm31_vm0, %v18_v9 }
  0x12   :  { %59 = vmatpush.msra.mxu0 %v19_v7  ;;  %122 = vmatpush.msra.mxu1 %v19_v7 }
  0x13   :  { %97 = vmatmul.msk.f32.vlgmr.msra.gmra.mxu0 %vm31_vm0, %v15_v10  ;;  %98 = vmatmul.msk.f32.vlgmr.msra.gmra.mxu1 %vm31_vm0, %v16_v11 }
  0x90   :  { %v61_v13 = vpop.f32.mrf.mxu0  ;;  %v64_v14 = vpop.f32.mrf.mxu1 }
  0x91   :  { %v62_v15 = vadd.f32 %v128_v12, %v61_v13  ;;  %v65_v16 = vadd.f32 %v128_v12, %v64_v14 }
  0x93   :  { %74 = vst.msk [vmem:[#allocation2] sm:$0xff] %vm73_vm1, %v62_v15 }
  0x94   :  { %75 = vst.msk [vmem:[#allocation2 + $0x8] sm:$0xff] %vm73_vm1, %v65_v16  ;;  %v67_v17 = vpop.f32.mrf.mxu2  ;;  %v70_v18 = vpop.f32.mrf.mxu3 }
  0x95   :  { %v68_v19 = vadd.f32 %v128_v12, %v67_v17  ;;  %v71_v20 = vadd.f32 %v128_v12, %v70_v18 }
  0x97   :  { %76 = vst.msk [vmem:[#allocation2 + $0x10] sm:$0xff] %vm73_vm1, %v68_v19 }
  0x98   :  { %78 = vst.msk [vmem:[#allocation2 + $0x18] sm:$0x3f] %vm77_vm2, %v71_v20 }
  0x99   :  { %91 = dma.vmem_to_hbm [thread:$0]  %s84_s11, 512, %s86_s0, [#allocation3], %s156_s2, %s156_s2, %s157_s14  }
  0x9a   :  { %153 = dma.done.wait [#allocation3], 512  }
  0x9b   :  { %154 = vsyncadd [#allocation3], 4294966784 }
  0x9c   :  { %96 = vsyncpa [#allocation3], 1 }

</bundles_post_ra>
